<compile_context>
chip_gen: v6e
topology: v6e:2x2x1
jax: 0.10.0
libtpu: 0.0.40
codegen_flags: <defaults>
</compile_context>

<pallas_src>
import functools

import jax
import jax.numpy as jnp
from jax.experimental import pallas as pl
from jax.experimental.pallas import tpu as pltpu


# ---------------------------------------------------------------------------
# Generation-aware budgets
# ---------------------------------------------------------------------------

@functools.lru_cache(maxsize=None)
def _tpu_budgets():
    """Returns (tile_bytes, vmem_limit_bytes, min_grid_tiles) for this chip.

    * 128 MiB-VMEM parts (v5e/v6e, single TensorCore): big ~4 MiB tiles, high
      VMEM limit, no forced grid split (the grid is a serial loop on 1 TC).
    * 64 MiB-VMEM parts (v7x, 2 TCs): ~2 MiB tiles, conservative VMEM limit,
      and prefer >= 2 tiles per TensorCore (>= 4 programs) so prefetch(i+1) /
      writeback(i-1) actually overlap compute(i).
    """
    vmem_bytes = None
    try:
        info = pltpu.get_tpu_info()
        for name in ("vmem_capacity_bytes", "vmem_size_bytes", "vmem_bytes"):
            v = getattr(info, name, None)
            if isinstance(v, int) and v > 0:
                vmem_bytes = v
                break
    except Exception:
        vmem_bytes = None
    if vmem_bytes is not None and vmem_bytes >= 96 * 1024 * 1024:
        return 4 * 1024 * 1024, 96 * 1024 * 1024, 1       # v5e / v6e (128 MiB VMEM)
    if vmem_bytes is not None:
        return 2 * 1024 * 1024, 40 * 1024 * 1024, 4       # v7x (64 MiB VMEM, 2 TCs)
    return 2 * 1024 * 1024, 32 * 1024 * 1024, 1           # unknown: conservative


def _round_up(x, m):
    return ((x + m - 1) // m) * m


def _round_down(x, m):
    return (x // m) * m


def _cdiv(a, b):
    return (a + b - 1) // b


# ---------------------------------------------------------------------------
# Kernels
# ---------------------------------------------------------------------------

def _norm_kernel(x_ref, o_ref, *, axis):
    """(x - mean) / std (ddof=1) over `axis` of the tile, f32 accumulation."""
    x = x_ref[...].astype(jnp.float32)
    n = x.shape[axis]
    mean = jnp.sum(x, axis=axis, keepdims=True) * (1.0 / n)
    diff = x - mean
    denom = (n - 1) if n > 1 else 1
    var = jnp.sum(diff * diff, axis=axis, keepdims=True) * (1.0 / denom)
    # rsqrt rides the EUP slot; the normalize is a cheap VPU multiply.
    # No epsilon (matches the PyTorch module): constant rows -> inf/NaN.
    o_ref[...] = (diff * jax.lax.rsqrt(var)).astype(o_ref.dtype)


def _packed_norm_kernel(x_ref, o_ref, *, d, g):
    """Last-axis norm with G logical rows of width D packed per 128-lane row.

    HBM loads/stores stay 128-lane dense; the (VPU/XLU-only, exact f32)
    segmented reduction runs on static lane slices inside the tile.
    """
    x = x_ref[...].astype(jnp.float32)          # (rows, g*d) with g*d == 128
    denom = (d - 1) if d > 1 else 1
    parts = []
    for s in range(g):
        seg = x[:, s * d:(s + 1) * d]
        mean = jnp.sum(seg, axis=-1, keepdims=True) * (1.0 / d)
        diff = seg - mean
        var = jnp.sum(diff * diff, axis=-1, keepdims=True) * (1.0 / denom)
        parts.append(diff * jax.lax.rsqrt(var))
    o_ref[...] = jnp.concatenate(parts, axis=-1).astype(o_ref.dtype)


# ---------------------------------------------------------------------------
# dim == last axis
# ---------------------------------------------------------------------------

def _norm_last_axis(x):
    orig_shape = x.shape
    D = orig_shape[-1]
    M = 1
    for s in orig_shape[:-1]:
        M *= s

    itemsize = jnp.dtype(x.dtype).itemsize
    tile_bytes, vmem_limit, min_tiles = _tpu_budgets()
    row_align = 8 * max(1, 4 // itemsize)   # f32: 8, bf16: 16, int8/fp8: 32

    # Lane packing for small D: (M, D) -> (M//G, G*D == 128) is a free
    # contiguous reshape; turns lane-sparse masked stores into 128-wide DMAs.
    G = 128 // D if (0 < D < 128 and 128 % D == 0) else 1
    packed = G > 1 and D >= 8 and (M % G == 0)

    if packed:
        rows_total, row_width = M // G, 128
        kernel = functools.partial(_packed_norm_kernel, d=D, g=G)
    else:
        rows_total, row_width = M, D
        kernel = functools.partial(_norm_kernel, axis=-1)

    x2d = x.reshape(rows_total, row_width)

    # Byte-budgeted row block; cdiv grid + masked boundary block means no
    # divisibility constraint and no HBM pad/slice passes for ragged M.
    row_bytes = max(1, row_width * itemsize)
    cap_rows = max(row_align, _round_down(tile_bytes // row_bytes, row_align))
    if rows_total <= row_align:
        block_rows = rows_total                       # tiny array: one full block
    else:
        block_rows = min(cap_rows, _round_up(rows_total, row_align))
        # v7x only: make sure both TensorCores get >= 2 pipelined tiles each.
        if (min_tiles > 1 and _cdiv(rows_total, block_rows) < min_tiles
                and rows_total >= min_tiles * row_align):
            block_rows = max(row_align,
                             _round_down(rows_total // min_tiles, row_align))
    # TODO(synk): if even row_align * row_width overflows the VMEM budget
    # (pathologically large D), switch to a K-grid accumulator variant.

    grid = (_cdiv(rows_total, block_rows),)
    out2d = pl.pallas_call(
        kernel,
        out_shape=jax.ShapeDtypeStruct((rows_total, row_width), x.dtype),
        grid_spec=pltpu.PrefetchScalarGridSpec(
            num_scalar_prefetch=0,
            grid=grid,
            in_specs=[pl.BlockSpec((block_rows, row_width), lambda i: (i, 0))],
            out_specs=pl.BlockSpec((block_rows, row_width), lambda i: (i, 0)),
        ),
        compiler_params=pltpu.CompilerParams(
            dimension_semantics=("parallel",),
            vmem_limit_bytes=vmem_limit,
        ),
    )(x2d)
    return out2d.reshape(orig_shape)


# ---------------------------------------------------------------------------
# dim != last axis
# ---------------------------------------------------------------------------

def _norm_middle_axis(x, axis):
    """Normalize over a non-last axis WITHOUT transposing in HBM.

    View as (pre, R, post) (free contiguous reshape); tiles are
    (pre_block, R, block_post) with the original minor dim lane-dense.
    pre_block grows to keep multi-MiB tiles when R * post is small.
    """
    orig_shape = x.shape
    R = orig_shape[axis]
    pre = 1
    for s in orig_shape[:axis]:
        pre *= s
    post = 1
    for s in orig_shape[axis + 1:]:
        post *= s
    x3d = x.reshape(pre, R, post)

    itemsize = jnp.dtype(x.dtype).itemsize
    tile_bytes, vmem_limit, min_tiles = _tpu_budgets()

    if post % 128 == 0:
        cap_post = max(128, _round_down(tile_bytes // max(1, R * itemsize), 128))
        block_post = min(post, cap_post)
    else:
        block_post = post   # full minor dim (inherently lane-sparse if < 128)
    # TODO(synk): if R * block_post alone overflows the VMEM budget, switch to a
    # K-grid accumulator variant over R instead of one huge tile.

    slab_bytes = max(1, R * block_post * itemsize)
    pre_block = max(1, min(pre, tile_bytes // slab_bytes))
    if min_tiles > 1:   # v7x: >= 2 tiles per TensorCore when the shape permits
        progs = _cdiv(pre, pre_block) * _cdiv(post, block_post)
        if progs < min_tiles and pre >= min_tiles:
            pre_block = max(1, pre // min_tiles)

    grid = (_cdiv(pre, pre_block), _cdiv(post, block_post))
    out3d = pl.pallas_call(
        functools.partial(_norm_kernel, axis=1),
        out_shape=jax.ShapeDtypeStruct((pre, R, post), x.dtype),
        grid_spec=pltpu.PrefetchScalarGridSpec(
            num_scalar_prefetch=0,
            grid=grid,
            in_specs=[pl.BlockSpec((pre_block, R, block_post),
                                   lambda i, j: (i, 0, j))],
            out_specs=pl.BlockSpec((pre_block, R, block_post),
                                   lambda i, j: (i, 0, j)),
        ),
        compiler_params=pltpu.CompilerParams(
            dimension_semantics=("parallel", "parallel"),
            vmem_limit_bytes=vmem_limit,
        ),
    )(x3d)
    return out3d.reshape(orig_shape)


# ---------------------------------------------------------------------------
# Public wrapper
# ---------------------------------------------------------------------------

@functools.partial(jax.jit, static_argnames=("dim",))
def mm_tensor_norm(x, dim=-1):
    """(x - mean(x, dim)) / std(x, dim, unbiased=True), matching MMTensorNorm."""
    axis = dim % x.ndim
    if axis == x.ndim - 1:
        return _norm_last_axis(x)
    return _norm_middle_axis(x, axis)


def _reference(x, dim=-1):
    mean = jnp.mean(x, axis=dim, keepdims=True)
    std = jnp.std(x, axis=dim, ddof=1, keepdims=True)
    return (x - mean) / std


if __name__ == "__main__":
    key = jax.random.PRNGKey(0)

    # MMTensorNorm(dim=-1) on a (batch, seq, hidden) tensor: hidden=32 < 128
    # exercises the lane-packed path (4 logical rows per 128-lane row).
    B, T, H = 2, 8, 32
    x = jax.random.normal(key, (B, T, H), dtype=jnp.float32)
    out = mm_tensor_norm(x, dim=-1)
    jax.block_until_ready(out)
    assert out.shape == x.shape and out.dtype == x.dtype
    assert jnp.allclose(out, _reference(x, dim=-1), atol=1e-5, rtol=1e-5)

    # dim != -1: normalization over the middle axis with 3-D
    # (pre_block, R, block_post) tiles -- no moveaxis/transpose HBM pass.
    out_mid = mm_tensor_norm(x, dim=1)
    jax.block_until_ready(out_mid)
    assert jnp.allclose(out_mid, _reference(x, dim=1), atol=1e-5, rtol=1e-5)

    # Ragged row count (M = 15, not a multiple of the packing/alignment):
    # handled by the cdiv grid + masked boundary block, no pad/slice passes.
    x_ragged = jax.random.normal(jax.random.PRNGKey(1), (3, 5, 32), dtype=jnp.float32)
    out_rag = mm_tensor_norm(x_ragged, dim=-1)
    jax.block_until_ready(out_rag)
    assert jnp.allclose(out_rag, _reference(x_ragged, dim=-1), atol=1e-5, rtol=1e-5)

    # Lane-dense D (multiple of 128): plain last-axis path.
    x_wide = jax.random.normal(jax.random.PRNGKey(2), (4, 6, 256), dtype=jnp.float32)
    out_wide = mm_tensor_norm(x_wide, dim=-1)
    jax.block_until_ready(out_wide)
    assert jnp.allclose(out_wide, _reference(x_wide, dim=-1), atol=1e-5, rtol=1e-5)

    print("KERNEL_OK")
</pallas_src>

<mosaic_0001>
module attributes {stable_mosaic.version = 11 : i64} {
  func.func @_packed_norm_kernel(%arg0: i32, %arg1: memref<4x128xf32, #tpu.memory_space<vmem>>, %arg2: memref<4x128xf32, #tpu.memory_space<vmem>>) attributes {dimension_semantics = [#tpu.dimension_semantics<parallel>], iteration_bounds = array<i64: 1>, scalar_prefetch = 0 : i64, scratch_operands = 0 : i64, tpu.core_type = #tpu.core_type<tc>, window_params = [{transform_indices = @transform_0, window_bounds = array<i64: 4, 128>}, {transform_indices = @transform_1, window_bounds = array<i64: 4, 128>}]} {
    %c0 = arith.constant 0 : index
    %c0_0 = arith.constant 0 : index
    %0 = vector.load %arg1[%c0, %c0_0] : memref<4x128xf32, #tpu.memory_space<vmem>>, vector<4x128xf32>
    %1 = vector.extract_strided_slice %0 {offsets = [0, 0], sizes = [4, 32], strides = [1, 1]} : vector<4x128xf32> to vector<4x32xf32>
    %cst = arith.constant dense<0.000000e+00> : vector<4xf32>
    %2 = vector.multi_reduction <add>, %1, %cst [1] : vector<4x32xf32> to vector<4xf32>
    %3 = vector.shape_cast %2 : vector<4xf32> to vector<4x1xf32>
    %cst_1 = arith.constant 3.125000e-02 : f32
    %4 = vector.broadcast %cst_1 : f32 to vector<4x1xf32>
    %5 = arith.mulf %3, %4 : vector<4x1xf32>
    %6 = vector.broadcast %5 : vector<4x1xf32> to vector<4x32xf32>
    %7 = arith.subf %1, %6 : vector<4x32xf32>
    %8 = arith.mulf %7, %7 : vector<4x32xf32>
    %cst_2 = arith.constant dense<0.000000e+00> : vector<4xf32>
    %9 = vector.multi_reduction <add>, %8, %cst_2 [1] : vector<4x32xf32> to vector<4xf32>
    %10 = vector.shape_cast %9 : vector<4xf32> to vector<4x1xf32>
    %cst_3 = arith.constant 0.0322580636 : f32
    %11 = vector.broadcast %cst_3 : f32 to vector<4x1xf32>
    %12 = arith.mulf %10, %11 : vector<4x1xf32>
    %13 = math.rsqrt %12 : vector<4x1xf32>
    %14 = vector.broadcast %13 : vector<4x1xf32> to vector<4x32xf32>
    %15 = arith.mulf %7, %14 : vector<4x32xf32>
    %16 = vector.extract_strided_slice %0 {offsets = [0, 32], sizes = [4, 32], strides = [1, 1]} : vector<4x128xf32> to vector<4x32xf32>
    %cst_4 = arith.constant dense<0.000000e+00> : vector<4xf32>
    %17 = vector.multi_reduction <add>, %16, %cst_4 [1] : vector<4x32xf32> to vector<4xf32>
    %18 = vector.shape_cast %17 : vector<4xf32> to vector<4x1xf32>
    %cst_5 = arith.constant 3.125000e-02 : f32
    %19 = vector.broadcast %cst_5 : f32 to vector<4x1xf32>
    %20 = arith.mulf %18, %19 : vector<4x1xf32>
    %21 = vector.broadcast %20 : vector<4x1xf32> to vector<4x32xf32>
    %22 = arith.subf %16, %21 : vector<4x32xf32>
    %23 = arith.mulf %22, %22 : vector<4x32xf32>
    %cst_6 = arith.constant dense<0.000000e+00> : vector<4xf32>
    %24 = vector.multi_reduction <add>, %23, %cst_6 [1] : vector<4x32xf32> to vector<4xf32>
    %25 = vector.shape_cast %24 : vector<4xf32> to vector<4x1xf32>
    %cst_7 = arith.constant 0.0322580636 : f32
    %26 = vector.broadcast %cst_7 : f32 to vector<4x1xf32>
    %27 = arith.mulf %25, %26 : vector<4x1xf32>
    %28 = math.rsqrt %27 : vector<4x1xf32>
    %29 = vector.broadcast %28 : vector<4x1xf32> to vector<4x32xf32>
    %30 = arith.mulf %22, %29 : vector<4x32xf32>
    %31 = vector.extract_strided_slice %0 {offsets = [0, 64], sizes = [4, 32], strides = [1, 1]} : vector<4x128xf32> to vector<4x32xf32>
    %cst_8 = arith.constant dense<0.000000e+00> : vector<4xf32>
    %32 = vector.multi_reduction <add>, %31, %cst_8 [1] : vector<4x32xf32> to vector<4xf32>
    %33 = vector.shape_cast %32 : vector<4xf32> to vector<4x1xf32>
    %cst_9 = arith.constant 3.125000e-02 : f32
    %34 = vector.broadcast %cst_9 : f32 to vector<4x1xf32>
    %35 = arith.mulf %33, %34 : vector<4x1xf32>
    %36 = vector.broadcast %35 : vector<4x1xf32> to vector<4x32xf32>
    %37 = arith.subf %31, %36 : vector<4x32xf32>
    %38 = arith.mulf %37, %37 : vector<4x32xf32>
    %cst_10 = arith.constant dense<0.000000e+00> : vector<4xf32>
    %39 = vector.multi_reduction <add>, %38, %cst_10 [1] : vector<4x32xf32> to vector<4xf32>
    %40 = vector.shape_cast %39 : vector<4xf32> to vector<4x1xf32>
    %cst_11 = arith.constant 0.0322580636 : f32
    %41 = vector.broadcast %cst_11 : f32 to vector<4x1xf32>
    %42 = arith.mulf %40, %41 : vector<4x1xf32>
    %43 = math.rsqrt %42 : vector<4x1xf32>
    %44 = vector.broadcast %43 : vector<4x1xf32> to vector<4x32xf32>
    %45 = arith.mulf %37, %44 : vector<4x32xf32>
    %46 = vector.extract_strided_slice %0 {offsets = [0, 96], sizes = [4, 32], strides = [1, 1]} : vector<4x128xf32> to vector<4x32xf32>
    %cst_12 = arith.constant dense<0.000000e+00> : vector<4xf32>
    %47 = vector.multi_reduction <add>, %46, %cst_12 [1] : vector<4x32xf32> to vector<4xf32>
    %48 = vector.shape_cast %47 : vector<4xf32> to vector<4x1xf32>
    %cst_13 = arith.constant 3.125000e-02 : f32
    %49 = vector.broadcast %cst_13 : f32 to vector<4x1xf32>
    %50 = arith.mulf %48, %49 : vector<4x1xf32>
    %51 = vector.broadcast %50 : vector<4x1xf32> to vector<4x32xf32>
    %52 = arith.subf %46, %51 : vector<4x32xf32>
    %53 = arith.mulf %52, %52 : vector<4x32xf32>
    %cst_14 = arith.constant dense<0.000000e+00> : vector<4xf32>
    %54 = vector.multi_reduction <add>, %53, %cst_14 [1] : vector<4x32xf32> to vector<4xf32>
    %55 = vector.shape_cast %54 : vector<4xf32> to vector<4x1xf32>
    %cst_15 = arith.constant 0.0322580636 : f32
    %56 = vector.broadcast %cst_15 : f32 to vector<4x1xf32>
    %57 = arith.mulf %55, %56 : vector<4x1xf32>
    %58 = math.rsqrt %57 : vector<4x1xf32>
    %59 = vector.broadcast %58 : vector<4x1xf32> to vector<4x32xf32>
    %60 = arith.mulf %52, %59 : vector<4x32xf32>
    %61 = tpu.concatenate %15, %30, %45, %60 in 1 : vector<4x32xf32>, vector<4x32xf32>, vector<4x32xf32>, vector<4x32xf32> -> vector<4x128xf32>
    %c0_16 = arith.constant 0 : index
    %c0_17 = arith.constant 0 : index
    %62 = vector.load %arg2[%c0_16, %c0_17] : memref<4x128xf32, #tpu.memory_space<vmem>>, vector<4x128xf32>
    tpu.vector_store %arg2[%c0_16, %c0_17], %61 {strides = array<i32>} : memref<4x128xf32, #tpu.memory_space<vmem>>, vector<4x128xf32>,
    return
  }
  func.func @transform_0(%arg0: i32) -> (i32, i32) {
    %c0_i32 = arith.constant 0 : i32
    %c0_i32_0 = arith.constant 0 : i32
    return %arg0, %c0_i32 : i32, i32
  }
  func.func @transform_1(%arg0: i32) -> (i32, i32) {
    %c0_i32 = arith.constant 0 : i32
    %c0_i32_0 = arith.constant 0 : i32
    return %arg0, %c0_i32 : i32, i32
  }
}

</mosaic_0001>

<bundles_post_ra>
// kernel: mm_tensor_norm.1
= control target key start
LH: loop header
LB: loop body
LE: loop exit
PB: predicated region body
PF: predicated region fallthrough
CT: control target
= control target key end

     0   :  { %s102_s8 = smov 96   ;;  %s103_s9 = smov 32   ;;  %vm9_vm0 = vcmask 257024   ;;  %vm80_vm1 = vcmask 261120   ;;  %vm82_vm2 = vcmask 523264   ;;  %vm84_vm3 = vcmask 785408   ;;  %s129_s0 = inlined_call_operand.vmem [shape: f32[4,128], index: 0, kind: input, shape index: {}]   ;;  %s130_s1 = inlined_call_operand.vmem [shape: f32[4,128], index: 1, kind: output, shape index: {}]  }
   0x1   :  { %v8_v0 = vld [vmem:[%s129_s0] sm:$0xf]  ;;  %s104_s10 = smov 64  }
   0x2   :  { %23 = vrot.lane.b32.xlu0 %v8_v0, %s102_s8  ;;  %61 = vrot.lane.b32.xlu1 %v8_v0, %s103_s9  ;;  %v10_v3 = vsel %vm9_vm0, %v8_v0, 0.0 }
   0x6   :  { %42 = vrot.lane.b32.xlu0 %v8_v0, %s104_s10 }
  0x74   :  { %v24_v1 = vpop.permute.xlu0 %23  ;;  %v62_v5 = vpop.permute.xlu1 %61 }
  0x75   :  { %v26_v2 = vsel %vm9_vm0, %v24_v1, 0.0  ;;  %v64_v7 = vsel %vm9_vm0, %v62_v5, 0.0 }
  0x76   :  { %27 = vadd.xlane.f32.xlu1 %v26_v2 }
  0x78   :  { %v43_v4 = vpop.permute.xlu0 %42 }
  0x79   :  { %v45_v6 = vsel %vm9_vm0, %v43_v4, 0.0 }
  0x7a   :  { %46 = vadd.xlane.f32.xlu0 %v45_v6  ;;  %11 = vadd.xlane.f32.xlu1 %v10_v3 }
  0x7e   :  { %65 = vadd.xlane.f32.xlu0 %v64_v7 }
  0xff   :  { %v28_v8 = vpop.xlane.xlu1 %27 }
 0x100   :  { %v29_v9 = vmul.f32 0.03125, %v28_v8 }
 0x102   :  { %v30_v10 = vsub.f32 %v8_v0, %v29_v9 }
 0x103   :  { %v47_v11 = vpop.xlane.xlu0 %46  ;;  %v12_v20 = vpop.xlane.xlu1 %11 }
 0x104   :  { %v48_v12 = vmul.f32 0.03125, %v47_v11  ;;  %v31_v13 = vmul.f32 %v30_v10, %v30_v10  ;;  %v13_v21 = vmul.f32 0.03125, %v12_v20 }
 0x106   :  { %v49_v14 = vsub.f32 %v8_v0, %v48_v12  ;;  %33 = vrot.lane.b32.xlu0 %v31_v13, %s102_s8  ;;  %v14_v22 = vsub.f32 %v8_v0, %v13_v21 }
 0x107   :  { %v66_v15 = vpop.xlane.xlu0 %65 }
 0x108   :  { %v67_v16 = vmul.f32 0.03125, %v66_v15  ;;  %v50_v17 = vmul.f32 %v49_v14, %v49_v14  ;;  %v15_v23 = vmul.f32 %v14_v22, %v14_v22 }
 0x10a   :  { %v68_v18 = vsub.f32 %v8_v0, %v67_v16  ;;  %52 = vrot.lane.b32.xlu1 %v50_v17, %s104_s10  ;;  %v16_v24 = vsel %vm9_vm0, %v15_v23, 0.0 }
 0x10c   :  { %v69_v19 = vmul.f32 %v68_v18, %v68_v18 }
 0x10e   :  { %71 = vrot.lane.b32.xlu1 %v69_v19, %s103_s9 }
 0x125   :  { %17 = vadd.xlane.f32.xlu0 %v16_v24 }
 0x178   :  { %v34_v25 = vpop.permute.xlu0 %33 }
 0x179   :  { %v36_v26 = vsel %vm9_vm0, %v34_v25, 0.0 }
 0x17a   :  { %37 = vadd.xlane.f32.xlu1 %v36_v26 }
 0x17c   :  { %v53_v27 = vpop.permute.xlu1 %52 }
 0x17d   :  { %v55_v28 = vsel %vm9_vm0, %v53_v27, 0.0 }
 0x17e   :  { %56 = vadd.xlane.f32.xlu0 %v55_v28 }
 0x180   :  { %v72_v29 = vpop.permute.xlu1 %71 }
 0x181   :  { %v74_v30 = vsel %vm9_vm0, %v72_v29, 0.0 }
 0x182   :  { %75 = vadd.xlane.f32.xlu0 %v74_v30 }
 0x1ae   :  { %v18_v31 = vpop.xlane.xlu0 %17 }
 0x1af   :  { %v19_v34 = vmul.f32 0.032258064, %v18_v31 }
 0x203   :  { %v38_v32 = vpop.xlane.xlu1 %37 }
 0x204   :  { %v39_v33 = vmul.f32 0.032258064, %v38_v32 }
 0x206   :  { %94 = vrsqrt.f32 %v39_v33 }
 0x207   :  { %v57_v35 = vpop.xlane.xlu0 %56  ;;  %96 = vrsqrt.f32 %v19_v34 }
 0x208   :  { %v58_v36 = vmul.f32 0.032258064, %v57_v35 }
 0x20a   :  { %98 = vrsqrt.f32 %v58_v36 }
 0x20b   :  { %v76_v37 = vpop.xlane.xlu0 %75 }
 0x20c   :  { %v77_v38 = vmul.f32 0.032258064, %v76_v37 }
 0x20e   :  { %100 = vrsqrt.f32 %v77_v38 }
 0x213   :  { %v95_v39 = vpop.eup %94 }
 0x214   :  { %v97_v40 = vpop.eup %96  ;;  %v41_v42 = vmul.f32 %v95_v39, %v30_v10 }
 0x215   :  { %v21_v44 = vmul.f32 %v97_v40, %v14_v22 }
 0x217   :  { %v99_v41 = vpop.eup %98  ;;  %v81_v46 = vsel %vm80_vm1, %v21_v44, %v41_v42 }
 0x218   :  { %v60_v43 = vmul.f32 %v99_v41, %v49_v14 }
 0x21a   :  { %v83_v48 = vsel %vm82_vm2, %v81_v46, %v60_v43 }
 0x21b   :  { %v101_v45 = vpop.eup %100 }
 0x21c   :  { %v79_v47 = vmul.f32 %v101_v45, %v68_v18 }
 0x21e   :  { %v85_v49 = vsel %vm84_vm3, %v83_v48, %v79_v47 }
 0x21f   :  { %86 = vst [vmem:[%s130_s1] sm:$0xf] %v85_v49 }

</bundles_post_ra>
